<compile_context>
chip_gen: v6e
topology: v6e:2x2x1
jax: 0.10.0
libtpu: 0.0.40
codegen_flags: <defaults>
</compile_context>

<pallas_src>
import jax
import jax.numpy as jnp
from jax.experimental import pallas as pl
from jax.experimental.pallas import tpu as pltpu

PACK = 4            # batch rows packed per lane-row: 4 * 32 = 128 lanes
_SMALL_BATCH = 512  # below this a plain fused XLA op beats the Pallas launch


def _packed_linear_kernel(x_ref, w_ref, b_ref, o_ref):
    # x_ref: [TB, 8]    -- 4 batch rows x 2 features packed along lanes
    # w_ref: [8, 128]   -- block-diagonal (4 copies of W_eff[2,32])
    # b_ref: [1, 128]   -- b_eff tiled 4x
    # o_ref: [TB, 128]  -- 4 batch rows x 32 outputs, lane-dense unmasked stores
    x = x_ref[...].astype(jnp.float32)  # in-kernel cast (free on VPU)
    o_ref[...] = (
        jnp.dot(x, w_ref[...], preferred_element_type=jnp.float32) + b_ref[...]
    )


def _fuse_params(params):
    """Collapse Linear(2,10)->Linear(10,20)->Linear(20,32) (no activations)
    into a single effective Linear(2,32). Exact in real arithmetic."""
    w1, b1, w2, b2, w3, b3 = params
    w_eff = (w1 @ w2 @ w3).astype(jnp.float32)               # [2, 32]
    b_eff = ((b1 @ w2 + b2) @ w3 + b3).astype(jnp.float32)   # [1, 32]
    return w_eff, b_eff


def _pack_params(w_eff, b_eff):
    """Block-diagonal packing so 4 batch rows share one 128-lane output row."""
    d_in, d_out = w_eff.shape            # (2, 32)
    w_big = jnp.zeros((PACK * d_in, PACK * d_out), jnp.float32)
    for i in range(PACK):
        w_big = w_big.at[i * d_in:(i + 1) * d_in,
                         i * d_out:(i + 1) * d_out].set(w_eff)
    b_big = jnp.tile(b_eff, (1, PACK))   # [1, 128]
    return w_big, b_big


def _pallas_forward(x, w_big, b_big):
    B = x.shape[0]
    B_pad = ((B + PACK - 1) // PACK) * PACK
    if B_pad != B:
        x = jnp.pad(x, ((0, B_pad - B), (0, 0)))
    P = B_pad // PACK                          # packed rows
    x_packed = x.reshape(P, PACK * 2)          # [P, 8], free row-major view

    # Packed-row tile: single block for small P (block == full dim is always
    # layout-valid); otherwise a multiple-of-8 tile capped at 4096 packed rows
    # (working set stays well inside every generation's VMEM budget) with at
    # least 2 grid steps so v7x's two TensorCores both get work.
    if P <= 1024:
        TB = P
    else:
        TB = min(4096, ((pl.cdiv(P, 2) + 7) // 8) * 8)
    grid = (pl.cdiv(P, TB),)

    out = pl.pallas_call(
        _packed_linear_kernel,
        out_shape=jax.ShapeDtypeStruct((P, PACK * 32), jnp.float32),
        grid=grid,
        in_specs=[
            pl.BlockSpec((TB, PACK * 2), lambda i: (i, 0)),     # x: tiled over batch
            pl.BlockSpec((PACK * 2, PACK * 32), lambda i: (0, 0)),  # W_big resident
            pl.BlockSpec((1, PACK * 32), lambda i: (0, 0)),         # b_big resident
        ],
        out_specs=pl.BlockSpec((TB, PACK * 32), lambda i: (i, 0)),
        compiler_params=pltpu.CompilerParams(
            dimension_semantics=("parallel",),
        ),
        cost_estimate=pl.CostEstimate(
            flops=2 * P * (PACK * 2) * (PACK * 32),
            transcendentals=0,
            bytes_accessed=P * (PACK * 2 + PACK * 32) * 4
            + (PACK * 2 * PACK * 32 + PACK * 32) * 4,
        ),
    )(x_packed, w_big, b_big)

    return out.reshape(B_pad, 32)[:B]          # free bitcast back + drop padding


def make_forward(params, force_pallas=False):
    """Returns a jitted forward(x, attention_mask) mirroring TestTransformer.forward.

    Parameter fusion and block-diagonal packing are done once here (hoisted out
    of the per-call path)."""
    w_eff, b_eff = _fuse_params(params)
    w_big, b_big = _pack_params(w_eff, b_eff)

    @jax.jit
    def forward(x, attention_mask):
        del attention_mask  # unused by the reference module
        B = x.shape[0]
        if (not force_pallas) and B < _SMALL_BATCH:
            # Small-batch fast path: one fused XLA op; the Pallas launch is
            # pure overhead at this size.
            out = x.astype(jnp.float32) @ w_eff + b_eff
        else:
            out = _pallas_forward(x, w_big, b_big)
        # glue: the `[:, None]` unsqueeze from the PyTorch forward
        return (out[:, None],)

    return forward


def init_params(key):
    """Deterministic parameter init matching nn.Linear shapes (stored as [in, out])."""
    dims = [(2, 10), (10, 20), (20, 32)]
    params = []
    for i, (din, dout) in enumerate(dims):
        kw, kb = jax.random.split(jax.random.fold_in(key, i))
        bound = 1.0 / (din ** 0.5)
        w = jax.random.uniform(kw, (din, dout), jnp.float32, -bound, bound)
        b = jax.random.uniform(kb, (1, dout), jnp.float32, -bound, bound)
        params += [w, b]
    return tuple(params)


if __name__ == "__main__":
    key = jax.random.PRNGKey(0)
    params = init_params(key)

    B = 8
    x = jax.random.normal(jax.random.fold_in(key, 100), (B, 2), jnp.float32)
    attention_mask = jnp.ones((B, 2), jnp.int32)  # unused, signature parity

    # reference: the original (un-fused) 3-layer computation in plain JAX
    w1, b1, w2, b2, w3, b3 = params
    ref = (((x @ w1 + b1) @ w2 + b2) @ w3 + b3)[:, None]

    # Pallas path (forced so the kernel itself is exercised at this small B)
    fwd_pallas = make_forward(params, force_pallas=True)
    (y,) = fwd_pallas(x, attention_mask)
    y = jax.block_until_ready(y)
    assert y.shape == (B, 1, 32), y.shape
    assert jnp.allclose(y, ref, atol=1e-5, rtol=1e-4), float(jnp.max(jnp.abs(y - ref)))

    # default dispatch (small-batch XLA fast path) must agree as well
    fwd = make_forward(params)
    (y2,) = fwd(x, attention_mask)
    y2 = jax.block_until_ready(y2)
    assert jnp.allclose(y2, ref, atol=1e-5, rtol=1e-4), float(jnp.max(jnp.abs(y2 - ref)))

    print("KERNEL_OK")
</pallas_src>

<mosaic_0001>
module attributes {stable_mosaic.version = 11 : i64} {
  func.func @_packed_linear_kernel(%arg0: i32, %arg1: memref<2x8xf32, #tpu.memory_space<vmem>>, %arg2: memref<8x128xf32, #tpu.memory_space<vmem>>, %arg3: memref<1x128xf32, #tpu.memory_space<vmem>>, %arg4: memref<2x128xf32, #tpu.memory_space<vmem>>) attributes {dimension_semantics = [#tpu.dimension_semantics<parallel>], iteration_bounds = array<i64: 1>, scalar_prefetch = 0 : i64, scratch_operands = 0 : i64, tpu.core_type = #tpu.core_type<tc>, window_params = [{transform_indices = @transform_0, window_bounds = array<i64: 2, 8>}, {pipeline_mode = #tpu.pipeline_mode<synchronous>, transform_indices = @transform_1, window_bounds = array<i64: 8, 128>}, {pipeline_mode = #tpu.pipeline_mode<synchronous>, transform_indices = @transform_2, window_bounds = array<i64: 1, 128>}, {transform_indices = @transform_3, window_bounds = array<i64: 2, 128>}]} {
    %c0 = arith.constant 0 : index
    %c0_0 = arith.constant 0 : index
    %0 = vector.load %arg1[%c0, %c0_0] : memref<2x8xf32, #tpu.memory_space<vmem>>, vector<2x8xf32>
    %c0_1 = arith.constant 0 : index
    %c0_2 = arith.constant 0 : index
    %1 = vector.load %arg2[%c0_1, %c0_2] : memref<8x128xf32, #tpu.memory_space<vmem>>, vector<8x128xf32>
    %cst = arith.constant dense<0.000000e+00> : vector<2x128xf32>
    %2 = tpu.matmul %0, %1, %cst {dimension_numbers = #tpu.dot_dimension_numbers<[1], [0], [0], [1], [0, 0, 1, 1], [], []>} : vector<2x8xf32>, vector<8x128xf32>, vector<2x128xf32> -> vector<2x128xf32>
    %c0_3 = arith.constant 0 : index
    %c0_4 = arith.constant 0 : index
    %3 = vector.load %arg3[%c0_3, %c0_4] : memref<1x128xf32, #tpu.memory_space<vmem>>, vector<1x128xf32>
    %4 = vector.broadcast %3 : vector<1x128xf32> to vector<2x128xf32>
    %5 = arith.addf %2, %4 : vector<2x128xf32>
    %c0_5 = arith.constant 0 : index
    %c0_6 = arith.constant 0 : index
    %6 = vector.load %arg4[%c0_5, %c0_6] : memref<2x128xf32, #tpu.memory_space<vmem>>, vector<2x128xf32>
    tpu.vector_store %arg4[%c0_5, %c0_6], %5 {strides = array<i32>} : memref<2x128xf32, #tpu.memory_space<vmem>>, vector<2x128xf32>,
    return
  }
  func.func @transform_0(%arg0: i32) -> (i32, i32) {
    %c0_i32 = arith.constant 0 : i32
    %c0_i32_0 = arith.constant 0 : i32
    return %arg0, %c0_i32 : i32, i32
  }
  func.func @transform_1(%arg0: i32) -> (i32, i32) {
    %c0_i32 = arith.constant 0 : i32
    %c0_i32_0 = arith.constant 0 : i32
    %c0_i32_1 = arith.constant 0 : i32
    return %c0_i32, %c0_i32_0 : i32, i32
  }
  func.func @transform_2(%arg0: i32) -> (i32, i32) {
    %c0_i32 = arith.constant 0 : i32
    %c0_i32_0 = arith.constant 0 : i32
    %c0_i32_1 = arith.constant 0 : i32
    return %c0_i32, %c0_i32_0 : i32, i32
  }
  func.func @transform_3(%arg0: i32) -> (i32, i32) {
    %c0_i32 = arith.constant 0 : i32
    %c0_i32_0 = arith.constant 0 : i32
    return %arg0, %c0_i32 : i32, i32
  }
}

</mosaic_0001>

<bundles_post_ra>
// kernel: forward.1
= control target key start
LH: loop header
LB: loop body
LE: loop exit
PB: predicated region body
PF: predicated region fallthrough
CT: control target
= control target key end

     0   :  { %vm23_vm0 = vcmask 64512   ;;  %v113_v0 = vmov 0.0   ;;  %vm114_vm1 = vmmov 0   ;;  %s147_s1 = inlined_call_operand.vmem [shape: f32[8,128], index: 1, kind: input, shape index: {}]   ;;  %s148_s0 = inlined_call_operand.vmem [shape: f32[2,8], index: 0, kind: input, shape index: {}]   ;;  %s149_s2 = inlined_call_operand.vmem [shape: f32[1,128], index: 2, kind: input, shape index: {}]   ;;  %s150_s3 = inlined_call_operand.vmem [shape: f32[2,128], index: 3, kind: output, shape index: {}]  }
   0x1   :  { %106 = vmatprep.subr.mxu0 %v113_v0  ;;  %v15_v1 = vld [vmem:[%s147_s1] sm:$0xff]  ;;  %108 = vmatprep.mubr.msk.f32.mxu0 %vm114_vm1, %v113_v0 }
   0x2   :  { %v14_v2 = vld [vmem:[%s148_s0] sm:$0x3]  ;;  %107 = vmatpush3.msra.mxu0 %v15_v1 }
   0x3   :  { %109 = vmatmul.mubr.msk.f32.vlgmr.msra.gmra.mxu0 %vm23_vm0, %v14_v2  ;;  %v102_v3 = vld [vmem:[%s149_s2] ss:$0 sm:$0xff] }
  0xc3   :  { %v93_v4 = vpop.f32.mrf.mxu0 }
  0xc4   :  { %v94_v5 = vadd.f32 %v102_v3, %v93_v4 }
  0xc5   :  { %v110_v6 = vpop.f32.mrf.mxu0 }
  0xc6   :  { %97 = vst [vmem:[%s150_s3] sm:$0x3] %v94_v5 }

</bundles_post_ra>
